<compile_context>
chip_gen: v7x
topology: tpu7x:2x2x1
jax: 0.10.0
libtpu: 0.0.40
codegen_flags: <defaults>
</compile_context>

<pallas_src>
import jax
import jax.numpy as jnp
from jax.experimental import pallas as pl
from jax.experimental.pallas import tpu as pltpu


# ---------------------------------------------------------------------------
# Pallas kernel: whole-batch fused backbone tail + CORAL head
# ---------------------------------------------------------------------------
def _coral_model_kernel(patches_ref,  # (B*HW, Cp)   bf16 im2col patches, whole batch
                        convw_ref,    # (Cp, Cout)   bf16 conv weight as matmul
                        convb_ref,    # (1, Cout)    f32 conv bias
                        pool_ref,     # (B, B*HW)    f32 block-diag mean-pool matrix (1/HW)
                        fcw_ref,      # (Cout, NC)   f32 fc weight (transposed)
                        bias_ref,     # (1, NC)      f32 fc bias + CORAL bias (pre-folded)
                        out_ref):     # (2, B, NC)   row 0 = logits, row 1 = probas
    # Conv2d-as-matmul over the WHOLE batch (M = B*HW): bf16 inputs, f32 MXU accumulate.
    h = jnp.dot(patches_ref[...], convw_ref[...],
                preferred_element_type=jnp.float32)            # (B*HW, Cout)
    h = jnp.maximum(h + convb_ref[...], 0.0)                   # bias + ReLU (VPU)

    # Global average pool on the MXU: block-diagonal (B, B*HW) matrix holding 1/HW,
    # so the 256-row sublane reduction and the divide become a single matmul.
    feat = jnp.dot(pool_ref[...], h,
                   preferred_element_type=jnp.float32)         # (B, Cout)

    # Classifier (batched, M = B) + folded (fc + CORAL) bias.
    logits = jnp.dot(feat, fcw_ref[...],
                     preferred_element_type=jnp.float32) + bias_ref[...]   # (B, NC)

    # Single merged output buffer (one tiny writeback instead of two).
    out_ref[0] = logits
    out_ref[1] = jax.nn.sigmoid(logits)
    # NOTE: back_model.classifier was replaced by Dropout(p); identity at inference.


# ---------------------------------------------------------------------------
# Glue: im2col + pallas_call wrapper
# ---------------------------------------------------------------------------
def _im2col_3x3(x_nchw):
    """(B, C, H, W) -> (B, H*W, C*9), same padding, column order (c, kh, kw)."""
    B, C, H, W = x_nchw.shape
    xp = jnp.pad(x_nchw, ((0, 0), (0, 0), (1, 1), (1, 1)))
    cols = [xp[:, :, kh:kh + H, kw:kw + W] for kh in range(3) for kw in range(3)]
    patches = jnp.stack(cols, axis=2)                 # (B, C, 9, H, W)
    patches = patches.reshape(B, C * 9, H * W)        # (B, C*9, HW), (c, kh, kw) order
    return jnp.transpose(patches, (0, 2, 1))          # (B, HW, C*9)
    # TODO(synk): at real backbone resolutions do the im2col inside the kernel
    # (9 shifted accumulating matmuls over a padded input tile) to avoid the 9x HBM blowup.


@jax.jit
def coral_model_forward(x_nchw, conv_w, conv_b, fc_w, fc_b, coral_b):
    """Returns (logits, probas), each of shape (B, num_classes), float32."""
    B, C, H, W = x_nchw.shape
    Cout = conv_w.shape[0]
    NC = fc_w.shape[0]
    HW = H * W
    Cp = C * 9

    # im2col in bf16 (halves patch DMA bytes; accumulation stays f32 inside the kernel).
    patches = _im2col_3x3(x_nchw.astype(jnp.float32)).reshape(B * HW, Cp)
    patches_bf16 = patches.astype(jnp.bfloat16)
    # conv weight (Cout, C, 3, 3) -> (Cp, Cout) matching patch column order (c, kh, kw)
    convw_mat = jnp.transpose(conv_w.reshape(Cout, Cp), (1, 0)).astype(jnp.bfloat16)
    convb_mat = conv_b.reshape(1, Cout).astype(jnp.float32)
    # Block-diagonal mean-pool matrix: feat[b] = (1/HW) * sum_hw h[b*HW + hw, :]
    pool_mat = jnp.kron(jnp.eye(B, dtype=jnp.float32),
                        jnp.full((1, HW), 1.0 / HW, dtype=jnp.float32))   # (B, B*HW)
    # fc weight (NC, Cout) -> (Cout, NC); fold fc bias + CORAL bias into one vector.
    fcw_mat = jnp.transpose(fc_w, (1, 0)).astype(jnp.float32)
    bias_mat = (fc_b + coral_b).reshape(1, NC).astype(jnp.float32)

    # Single grid step for the entire batch; whole arrays live in VMEM (tiny here).
    out = pl.pallas_call(
        _coral_model_kernel,
        out_shape=jax.ShapeDtypeStruct((2, B, NC), jnp.float32),
        compiler_params=pltpu.CompilerParams(vmem_limit_bytes=32 * 1024 * 1024),
    )(patches_bf16, convw_mat, convb_mat, pool_mat, fcw_mat, bias_mat)
    # TODO(synk): at real backbone sizes add an HW grid axis ("arbitrary") with a VMEM
    # running-sum scratch, plus a "parallel" batch axis so v7x's 2nd TensorCore is used.

    return out[0], out[1]


# ---------------------------------------------------------------------------
# Pure-JAX reference (for a sanity check)
# ---------------------------------------------------------------------------
def _reference(x_nchw, conv_w, conv_b, fc_w, fc_b, coral_b, bf16_inputs=False):
    B, C, H, W = x_nchw.shape
    Cout = conv_w.shape[0]
    patches = _im2col_3x3(x_nchw)                                   # (B, HW, C*9)
    wmat = jnp.transpose(conv_w.reshape(Cout, C * 9), (1, 0))
    if bf16_inputs:  # mirror the kernel's bf16 operands with f32 accumulation
        patches = patches.astype(jnp.bfloat16).astype(jnp.float32)
        wmat = wmat.astype(jnp.bfloat16).astype(jnp.float32)
    h = jnp.maximum(patches @ wmat + conv_b[None, None, :], 0.0)    # (B, HW, Cout)
    feat = jnp.mean(h, axis=1)                                      # (B, Cout)
    logits = feat @ fc_w.T + fc_b[None, :] + coral_b[None, :]
    return logits, jax.nn.sigmoid(logits)


if __name__ == "__main__":
    # Small shapes consistent with the module's forward.
    B, C, H, W = 2, 4, 16, 16
    Cout = 32            # backbone feature dim
    NUM_CLASSES = 8      # cfg.project.dataset.num_classes

    key = jax.random.PRNGKey(0)
    k_x, k_cw, k_cb, k_fw, k_fb = jax.random.split(key, 5)

    x = jax.random.normal(k_x, (B, C, H, W), dtype=jnp.float32)
    conv_w = 0.1 * jax.random.normal(k_cw, (Cout, C, 3, 3), dtype=jnp.float32)
    conv_b = 0.1 * jax.random.normal(k_cb, (Cout,), dtype=jnp.float32)
    fc_w = 0.1 * jax.random.normal(k_fw, (NUM_CLASSES, Cout), dtype=jnp.float32)
    fc_b = 0.1 * jax.random.normal(k_fb, (NUM_CLASSES,), dtype=jnp.float32)
    coral_b = jnp.zeros((NUM_CLASSES,), dtype=jnp.float32)          # nn.Parameter(torch.zeros)

    logits, probas = coral_model_forward(x, conv_w, conv_b, fc_w, fc_b, coral_b)
    jax.block_until_ready((logits, probas))

    # Exact-computation reference (bf16-rounded conv operands, f32 accumulation).
    ref_logits, ref_probas = _reference(x, conv_w, conv_b, fc_w, fc_b, coral_b,
                                        bf16_inputs=True)
    assert jnp.allclose(logits, ref_logits, rtol=1e-4, atol=1e-4)
    assert jnp.allclose(probas, ref_probas, rtol=1e-4, atol=1e-4)

    # Full-f32 module-semantics reference: bf16 conv inputs stay well within 1e-2.
    f32_logits, f32_probas = _reference(x, conv_w, conv_b, fc_w, fc_b, coral_b)
    assert jnp.allclose(logits, f32_logits, atol=1e-2)
    assert jnp.allclose(probas, f32_probas, atol=1e-2)

    assert logits.shape == (B, NUM_CLASSES) and probas.shape == (B, NUM_CLASSES)
    print("KERNEL_OK")
</pallas_src>

<mosaic_0001>
module attributes {stable_mosaic.version = 11 : i64} {
  func.func @_coral_model_kernel(%arg0: memref<512x36xbf16, #tpu.memory_space<vmem>>, %arg1: memref<36x32xbf16, #tpu.memory_space<vmem>>, %arg2: memref<1x32xf32, #tpu.memory_space<vmem>>, %arg3: memref<2x512xf32, #tpu.memory_space<vmem>>, %arg4: memref<32x8xf32, #tpu.memory_space<vmem>>, %arg5: memref<1x8xf32, #tpu.memory_space<vmem>>, %arg6: memref<2x2x8xf32, #tpu.memory_space<vmem>>) attributes {dimension_semantics = [], scalar_prefetch = 0 : i64, scratch_operands = 0 : i64, tpu.core_type = #tpu.core_type<tc>} {
    %c0 = arith.constant 0 : index
    %c0_0 = arith.constant 0 : index
    %0 = vector.load %arg0[%c0, %c0_0] : memref<512x36xbf16, #tpu.memory_space<vmem>>, vector<512x36xbf16>
    %c0_1 = arith.constant 0 : index
    %c0_2 = arith.constant 0 : index
    %1 = vector.load %arg1[%c0_1, %c0_2] : memref<36x32xbf16, #tpu.memory_space<vmem>>, vector<36x32xbf16>
    %cst = arith.constant dense<0.000000e+00> : vector<512x32xf32>
    %2 = tpu.matmul %0, %1, %cst {dimension_numbers = #tpu.dot_dimension_numbers<[1], [0], [0], [1], [0, 0, 1, 1], [], []>} : vector<512x36xbf16>, vector<36x32xbf16>, vector<512x32xf32> -> vector<512x32xf32>
    %c0_3 = arith.constant 0 : index
    %c0_4 = arith.constant 0 : index
    %3 = vector.load %arg2[%c0_3, %c0_4] : memref<1x32xf32, #tpu.memory_space<vmem>>, vector<1x32xf32>
    %4 = vector.broadcast %3 : vector<1x32xf32> to vector<512x32xf32>
    %5 = arith.addf %2, %4 : vector<512x32xf32>
    %cst_5 = arith.constant 0.000000e+00 : f32
    %6 = vector.broadcast %cst_5 : f32 to vector<512x32xf32>
    %7 = arith.maximumf %5, %6 : vector<512x32xf32>
    %c0_6 = arith.constant 0 : index
    %c0_7 = arith.constant 0 : index
    %8 = vector.load %arg3[%c0_6, %c0_7] : memref<2x512xf32, #tpu.memory_space<vmem>>, vector<2x512xf32>
    %cst_8 = arith.constant dense<0.000000e+00> : vector<2x32xf32>
    %9 = tpu.matmul %8, %7, %cst_8 {dimension_numbers = #tpu.dot_dimension_numbers<[1], [0], [0], [1], [0, 0, 1, 1], [], []>} : vector<2x512xf32>, vector<512x32xf32>, vector<2x32xf32> -> vector<2x32xf32>
    %c0_9 = arith.constant 0 : index
    %c0_10 = arith.constant 0 : index
    %10 = vector.load %arg4[%c0_9, %c0_10] : memref<32x8xf32, #tpu.memory_space<vmem>>, vector<32x8xf32>
    %cst_11 = arith.constant dense<0.000000e+00> : vector<2x8xf32>
    %11 = tpu.matmul %9, %10, %cst_11 {dimension_numbers = #tpu.dot_dimension_numbers<[1], [0], [0], [1], [0, 0, 1, 1], [], []>} : vector<2x32xf32>, vector<32x8xf32>, vector<2x8xf32> -> vector<2x8xf32>
    %c0_12 = arith.constant 0 : index
    %c0_13 = arith.constant 0 : index
    %12 = vector.load %arg5[%c0_12, %c0_13] : memref<1x8xf32, #tpu.memory_space<vmem>>, vector<1x8xf32>
    %13 = vector.broadcast %12 : vector<1x8xf32> to vector<2x8xf32>
    %14 = arith.addf %11, %13 : vector<2x8xf32>
    %c0_14 = arith.constant 0 : index
    %c0_15 = arith.constant 0 : index
    %c0_16 = arith.constant 0 : index
    %15 = vector.load %arg6[%c0_14, %c0_15, %c0_16] : memref<2x2x8xf32, #tpu.memory_space<vmem>>, vector<1x2x8xf32>
    %16 = vector.shape_cast %15 : vector<1x2x8xf32> to vector<2x8xf32>
    %17 = vector.shape_cast %14 : vector<2x8xf32> to vector<1x2x8xf32>
    tpu.vector_store %arg6[%c0_14, %c0_15, %c0_16], %17 {strides = array<i32>} : memref<2x2x8xf32, #tpu.memory_space<vmem>>, vector<1x2x8xf32>,
    %18 = arith.negf %14 : vector<2x8xf32>
    %19 = math.exp %18 : vector<2x8xf32>
    %cst_17 = arith.constant 1.000000e+00 : f32
    %20 = vector.broadcast %cst_17 : f32 to vector<2x8xf32>
    %21 = arith.addf %20, %19 : vector<2x8xf32>
    %22 = arith.divf %20, %21 : vector<2x8xf32>
    %c1 = arith.constant 1 : index
    %c0_18 = arith.constant 0 : index
    %c0_19 = arith.constant 0 : index
    %23 = vector.load %arg6[%c1, %c0_18, %c0_19] : memref<2x2x8xf32, #tpu.memory_space<vmem>>, vector<1x2x8xf32>
    %24 = vector.shape_cast %23 : vector<1x2x8xf32> to vector<2x8xf32>
    %25 = vector.shape_cast %22 : vector<2x8xf32> to vector<1x2x8xf32>
    tpu.vector_store %arg6[%c1, %c0_18, %c0_19], %25 {strides = array<i32>} : memref<2x2x8xf32, #tpu.memory_space<vmem>>, vector<1x2x8xf32>,
    return
  }
}

</mosaic_0001>

<bundles_post_ra>
// kernel: coral_model_forward.1
= control target key start
LH: loop header
LB: loop body
LE: loop exit
PB: predicated region body
PF: predicated region fallthrough
CT: control target
= control target key end

     0   :  { %vm275_vm0 = vcmask 293888   ;;  %vm372_vm1 = vcmask 1041408   ;;  %v1376_v36 = vmov 1983009808   ;;  %v735_v38 = vlaneseq  ;;  %s1709_s1 = inlined_call_operand.vmem [shape: bf16[36,32], index: 1, kind: input, shape index: {}]   ;;  %s1710_s0 = inlined_call_operand.vmem [shape: bf16[512,36], index: 0, kind: input, shape index: {}]   ;;  %s1711_s3 = inlined_call_operand.vmem [shape: f32[2,512], index: 3, kind: input, shape index: {}]   ;;  %s1712_s2 = inlined_call_operand.vmem [shape: f32[1,32], index: 2, kind: input, shape index: {}]   ;;  %s1713_s4 = inlined_call_operand.vmem [shape: f32[32,8], index: 4, kind: input, shape index: {}]   ;;  %s1714_s5 = inlined_call_operand.vmem [shape: f32[1,8], index: 5, kind: input, shape index: {}]   ;;  %s1715_s6 = inlined_call_operand.vmem [shape: f32[2,2,8], index: 6, kind: output, shape index: {}]  }
   0x1   :  { %v1336_v0 = vld [vmem:[%s1709_s1] sm:$0xff]   ;;  %v1337_v1 = vld [vmem:[%s1709_s1 + $0x8] sm:$0xff]   ;;  %v1338_v2 = vld [vmem:[%s1709_s1 + $0x10] ss:$0 sps:$4 sm:$0x33]   ;;  %v733_v37 = vunpack.c.l.s4 %v1376_v36  ;;  %vm1378_vm2 = vmmov 0  }
   0x2   :  { %1173 = vmatprep.subr.bf16.mxu0 %v1336_v0  ;;  %v1339_v3 = vld [vmem:[%s1710_s0] sm:$0xff]   ;;  %1324 = vmatprep.subr.bf16.mxu1 %v1336_v0  ;;  %v374_v4 = vsel %vm372_vm1, %v1338_v2, 0  ;;  %v1340_v5 = vld [vmem:[%s1710_s0 + $0x8] sm:$0xff]   ;;  %v1341_v6 = vld [vmem:[%s1710_s0 + $0x10] sm:$0xff]   ;;  %v736_v40 = vshrl.u32 %v735_v38, 7  ;;  %vm903_vm3 = vcmask 261120  }
   0x3   :  { %1174 = vmatpush3.bf16.msra.mxu0 %v1336_v0  ;;  %1327 = vmatpush3.bf16.msra.mxu1 %v1336_v0  ;;  %v1342_v7 = vld [vmem:[%s1710_s0 + $0x18] sm:$0xff]   ;;  %v1354_v8 = vld [vmem:[%s1710_s0 + $0xb0] sm:$0xff]   ;;  %v1343_v9 = vld [vmem:[%s1710_s0 + $0x20] sm:$0xff]   ;;  %v734_v39 = vunpack.c.0.s8 %v733_v37  ;;  %vm977_vm4 = vcmask 58368  }
   0x4   :  { %1175 = vmatprep.subr.bf16.mxu0 %v1337_v1  ;;  %1179 = vmatprep.mubr.msk.bf16.mxu0 %vm275_vm0, %v1339_v3  ;;  %v1356_v10 = vld [vmem:[%s1710_s0 + $0xb8] sm:$0xff]   ;;  %v1357_v11 = vld [vmem:[%s1710_s0 + $0xc0] sm:$0xff]   ;;  %v1344_v12 = vld [vmem:[%s1710_s0 + $0x28] sm:$0xff]  }
   0x5   :  { %1325 = vmatprep.subr.bf16.mxu1 %v1337_v1  ;;  %1223 = vmatprep.mubr.msk.bf16.mxu1 %vm275_vm0, %v1354_v8  ;;  %v1345_v13 = vld [vmem:[%s1710_s0 + $0x30] sm:$0xff]   ;;  %v1359_v14 = vld [vmem:[%s1710_s0 + $0xc8] sm:$0xff]   ;;  %v1346_v16 = vld [vmem:[%s1710_s0 + $0x38] sm:$0xff]   ;;  %v737_v41 = vsub.s32 %v734_v39, %v736_v40 }
   0x6   :  { %v1361_v15 = vld [vmem:[%s1710_s0 + $0xd0] sm:$0xff]   ;;  %v1363_v17 = vld [vmem:[%s1710_s0 + $0xd8] sm:$0xff]   ;;  %v1347_v18 = vld [vmem:[%s1710_s0 + $0x40] sm:$0xff]  }
   0x7   :  { %1176 = vmatpush3.bf16.msra.mxu0 %v1337_v1  ;;  %1328 = vmatpush3.bf16.msra.mxu1 %v1337_v1  ;;  %v1365_v19 = vld [vmem:[%s1710_s0 + $0xe0] sm:$0xff]   ;;  %v1348_v20 = vld [vmem:[%s1710_s0 + $0x48] sm:$0xff]   ;;  %v1349_v22 = vld [vmem:[%s1710_s0 + $0x50] sm:$0xff]  }
   0x8   :  { %1330 = vmatprep.subr.msk.bf16.mxu0 %vm372_vm1, %v1338_v2  ;;  %1331 = vmatprep.subr.msk.bf16.mxu1 %vm372_vm1, %v1338_v2  ;;  %v1367_v21 = vld [vmem:[%s1710_s0 + $0xe8] sm:$0xff]   ;;  %v1369_v23 = vld [vmem:[%s1710_s0 + $0xf0] sm:$0xff]   ;;  %v1350_v24 = vld [vmem:[%s1710_s0 + $0x58] sm:$0xff]  }
   0x9   :  { %v1370_v25 = vld [vmem:[%s1710_s0 + $0xf8] sm:$0xff]   ;;  %v1351_v26 = vld [vmem:[%s1710_s0 + $0x60] sm:$0xff]   ;;  %v1352_v27 = vld [vmem:[%s1710_s0 + $0x68] sm:$0xff]  }
   0xa   :  { %v1353_v28 = vld [vmem:[%s1710_s0 + $0x70] sm:$0xff]   ;;  %v1355_v29 = vld [vmem:[%s1710_s0 + $0x78] sm:$0xff]   ;;  %v1358_v30 = vld [vmem:[%s1710_s0 + $0x80] sm:$0xff]  }
   0xb   :  { %1178 = vmatpush3.bf16.msra.mxu0 %v374_v4  ;;  %1329 = vmatpush3.bf16.msra.mxu1 %v374_v4  ;;  %v1360_v31 = vld [vmem:[%s1710_s0 + $0x88] sm:$0xff]   ;;  %v1362_v32 = vld [vmem:[%s1710_s0 + $0x90] sm:$0xff]   ;;  %v1364_v33 = vld [vmem:[%s1710_s0 + $0x98] sm:$0xff]  }
   0xc   :  { %v1366_v34 = vld [vmem:[%s1710_s0 + $0xa0] sm:$0xff]   ;;  %v1368_v35 = vld [vmem:[%s1710_s0 + $0xa8] sm:$0xff]  }
   0xd   :  { %v729_v42 = vld [vmem:[%s1711_s3] sm:$0xff] }
   0xe   :  { %1180 = vmatmul.mubr.msk.bf16.vlgmr.msra.gmra.mrb[0].mxu0 %vm275_vm0, %v1340_v5  ;;  %1224 = vmatmul.mubr.msk.bf16.vlgmr.msra.gmra.mrb[0].mxu1 %vm275_vm0, %v1356_v10  ;;  %v1555_v43 = vrot.slane %v729_v42, %v737_v41  ;;  %v731_v45 = vcombine.high %v729_v42, %v729_v42  ;;  %v1564_v47 = vld [vmem:[%s1712_s2] ss:$0 sm:$0xff] }
   0xf   :  { %1183 = vmatprep.mubr.msk.bf16.mxu0 %vm275_vm0, %v1341_v6  ;;  %1227 = vmatprep.mubr.msk.bf16.mxu1 %vm275_vm0, %v1357_v11 }
  0x10   :  { %v746_v44 = vcombine.high %v1555_v43, %v1555_v43  ;;  %v1559_v46 = vrot.slane %v731_v45, %v737_v41 }
  0x16   :  { %1184 = vmatmul.mubr.msk.bf16.gmra.mrb[4].mxu0 %vm275_vm0, %v1342_v7  ;;  %1228 = vmatmul.mubr.msk.bf16.gmra.mrb[4].mxu1 %vm275_vm0, %v1359_v14 }
  0x17   :  { %1187 = vmatprep.mubr.msk.bf16.mxu0 %vm275_vm0, %v1343_v9  ;;  %1231 = vmatprep.mubr.msk.bf16.mxu1 %vm275_vm0, %v1361_v15 }
  0x1e   :  { %1188 = vmatmul.mubr.msk.bf16.gmra.mrb[8].mxu0 %vm275_vm0, %v1344_v12  ;;  %1232 = vmatmul.mubr.msk.bf16.gmra.mrb[8].mxu1 %vm275_vm0, %v1363_v17 }
  0x1f   :  { %1191 = vmatprep.mubr.msk.bf16.mxu0 %vm275_vm0, %v1345_v13  ;;  %1235 = vmatprep.mubr.msk.bf16.mxu1 %vm275_vm0, %v1365_v19 }
  0x26   :  { %1192 = vmatmul.mubr.msk.bf16.gmra.mrb[12].mxu0 %vm275_vm0, %v1346_v16  ;;  %1236 = vmatmul.mubr.msk.bf16.gmra.mrb[12].mxu1 %vm275_vm0, %v1367_v21 }
  0x27   :  { %1195 = vmatprep.mubr.msk.bf16.mxu0 %vm275_vm0, %v1347_v18  ;;  %1239 = vmatprep.mubr.msk.bf16.mxu1 %vm275_vm0, %v1369_v23 }
  0x2e   :  { %1196 = vmatmul.mubr.msk.bf16.gmra.mrb[16].mxu0 %vm275_vm0, %v1348_v20  ;;  %1240 = vmatmul.mubr.msk.bf16.gmra.mrb[16].mxu1 %vm275_vm0, %v1370_v25 }
  0x2f   :  { %1199 = vmatprep.mubr.msk.bf16.mxu0 %vm275_vm0, %v1349_v22  ;;  %816 = vmatprep.mubr.f32.mxu1 %v746_v44 }
  0x36   :  { %1200 = vmatmul.mubr.msk.bf16.gmra.mrb[20].mxu0 %vm275_vm0, %v1350_v24 }
  0x37   :  { %1203 = vmatprep.mubr.msk.bf16.mxu0 %vm275_vm0, %v1351_v26 }
  0x3e   :  { %1204 = vmatmul.mubr.msk.bf16.gmra.mrb[24].mxu0 %vm275_vm0, %v1352_v27 }
  0x3f   :  { %1207 = vmatprep.mubr.msk.bf16.mxu0 %vm275_vm0, %v1353_v28 }
  0x46   :  { %1208 = vmatmul.mubr.msk.bf16.gmra.mrb[28].mxu0 %vm275_vm0, %v1355_v29 }
  0x47   :  { %1211 = vmatprep.mubr.msk.bf16.mxu0 %vm275_vm0, %v1358_v30 }
  0x4e   :  { %1212 = vmatmul.mubr.msk.bf16.gmra.mrb[32].mxu0 %vm275_vm0, %v1360_v31 }
  0x4f   :  { %1215 = vmatprep.mubr.msk.bf16.mxu0 %vm275_vm0, %v1362_v32 }
  0x56   :  { %1216 = vmatmul.mubr.msk.bf16.gmra.mrb[36].mxu0 %vm275_vm0, %v1364_v33 }
  0x57   :  { %1219 = vmatprep.mubr.msk.bf16.mxu0 %vm275_vm0, %v1366_v34 }
  0x5e   :  { %1220 = vmatmul.mubr.msk.bf16.gmra.mrb[40].mxu0 %vm275_vm0, %v1368_v35 }
  0xe1   :  { %v1181_v48 = vpop.f32.mrb[0].mxu0  ;;  %v1225_v63 = vpop.f32.mrb[0].mxu1 }
  0xe2   :  { %v419_v49 = vadd.f32 %v1181_v48, %v1564_v47  ;;  %v410_v50 = vpop.f32.mrb[1].mxu0  ;;  %v595_v2 = vadd.f32 %v1225_v63, %v1564_v47  ;;  %v586_v3 = vpop.f32.mrb[1].mxu1 }
  0xe3   :  { %v411_v51 = vadd.f32 %v1564_v47, %v410_v50  ;;  %v1182_v52 = vpop.f32.mrb[2].mxu0  ;;  %v587_v6 = vadd.f32 %v1564_v47, %v586_v3  ;;  %v1226_v7 = vpop.f32.mrb[2].mxu1 }
  0xe4   :  { %v422_v53 = vadd.f32 %v1182_v52, %v1564_v47  ;;  %v413_v54 = vpop.f32.mrb[3].mxu0  ;;  %v667_v56 = vmax.f32 %v419_v49, 0.0  ;;  %v711_v10 = vmax.f32 %v595_v2, 0.0  ;;  %v598_v11 = vadd.f32 %v1226_v7, %v1564_v47  ;;  %v589_v12 = vpop.f32.mrb[3].mxu1 }
  0xe5   :  { %v414_v55 = vadd.f32 %v1564_v47, %v413_v54  ;;  %v665_v58 = vmax.f32 %v411_v51, 0.0  ;;  %v709_v14 = vmax.f32 %v587_v6, 0.0  ;;  %v590_v15 = vadd.f32 %v1564_v47, %v589_v12 }
  0xe6   :  { %v668_v57 = vmax.f32 %v422_v53, 0.0  ;;  %v712_v18 = vmax.f32 %v598_v11, 0.0 }
  0xe7   :  { %v666_v59 = vmax.f32 %v414_v55, 0.0  ;;  %v710_v21 = vmax.f32 %v590_v15, 0.0 }
  0xe8   :  { %v1570_v60 = vpack.c.bf16 %v668_v57, %v667_v56  ;;  %v1584_v23 = vpack.c.bf16 %v712_v18, %v711_v10 }
  0xe9   :  { %v1572_v61 = vpack.c.bf16 %v666_v59, %v665_v58  ;;  %v1185_v62 = vpop.f32.mrb[4].mxu0  ;;  %v1588_v26 = vpack.c.bf16 %v710_v21, %v709_v14  ;;  %v1229_v27 = vpop.f32.mrb[4].mxu1 }
  0xea   :  { %v435_v0 = vadd.f32 %v1185_v62, %v1564_v47  ;;  %v426_v1 = vpop.f32.mrb[5].mxu0  ;;  %v611_v30 = vadd.f32 %v1229_v27, %v1564_v47  ;;  %v602_v31 = vpop.f32.mrb[5].mxu1 }
  0xeb   :  { %v427_v4 = vadd.f32 %v1564_v47, %v426_v1  ;;  %v1186_v5 = vpop.f32.mrb[6].mxu0  ;;  %v603_v34 = vadd.f32 %v1564_v47, %v602_v31  ;;  %v1230_v35 = vpop.f32.mrb[6].mxu1 }
  0xec   :  { %v438_v8 = vadd.f32 %v1186_v5, %v1564_v47  ;;  %v429_v9 = vpop.f32.mrb[7].mxu0  ;;  %v671_v16 = vmax.f32 %v435_v0, 0.0  ;;  %v715_v38 = vmax.f32 %v611_v30, 0.0  ;;  %v614_v39 = vadd.f32 %v1230_v35, %v1564_v47  ;;  %v605_v40 = vpop.f32.mrb[7].mxu1 }
  0xed   :  { %v430_v13 = vadd.f32 %v1564_v47, %v429_v9  ;;  %v669_v19 = vmax.f32 %v427_v4, 0.0  ;;  %v713_v42 = vmax.f32 %v603_v34, 0.0  ;;  %v606_v44 = vadd.f32 %v1564_v47, %v605_v40 }
  0xee   :  { %v672_v17 = vmax.f32 %v438_v8, 0.0  ;;  %v716_v49 = vmax.f32 %v614_v39, 0.0 }
  0xef   :  { %v670_v20 = vmax.f32 %v430_v13, 0.0  ;;  %v714_v52 = vmax.f32 %v606_v44, 0.0 }
  0xf0   :  { %v1582_v22 = vpack.c.bf16 %v672_v17, %v671_v16  ;;  %v1600_v54 = vpack.c.bf16 %v716_v49, %v715_v38 }
  0xf1   :  { %v1586_v24 = vpack.c.bf16 %v670_v20, %v669_v19  ;;  %v1189_v25 = vpop.f32.mrb[8].mxu0  ;;  %v1604_v57 = vpack.c.bf16 %v714_v52, %v713_v42  ;;  %v1233_v58 = vpop.f32.mrb[8].mxu1 }
  0xf2   :  { %v451_v28 = vadd.f32 %v1189_v25, %v1564_v47  ;;  %v442_v29 = vpop.f32.mrb[9].mxu0  ;;  %v627_v63 = vadd.f32 %v1233_v58, %v1564_v47  ;;  %v618_v0 = vpop.f32.mrb[9].mxu1 }
  0xf3   :  { %v443_v32 = vadd.f32 %v1564_v47, %v442_v29  ;;  %v1190_v33 = vpop.f32.mrb[10].mxu0  ;;  %v619_v3 = vadd.f32 %v1564_v47, %v618_v0  ;;  %v1234_v4 = vpop.f32.mrb[10].mxu1 }
  0xf4   :  { %v454_v36 = vadd.f32 %v1190_v33, %v1564_v47  ;;  %v445_v37 = vpop.f32.mrb[11].mxu0  ;;  %v675_v45 = vmax.f32 %v451_v28, 0.0  ;;  %v719_v7 = vmax.f32 %v627_v63, 0.0  ;;  %v630_v8 = vadd.f32 %v1234_v4, %v1564_v47  ;;  %v621_v9 = vpop.f32.mrb[11].mxu1 }
  0xf5   :  { %v446_v41 = vadd.f32 %v1564_v47, %v445_v37  ;;  %v673_v50 = vmax.f32 %v443_v32, 0.0  ;;  %v717_v11 = vmax.f32 %v619_v3, 0.0  ;;  %v622_v12 = vadd.f32 %v1564_v47, %v621_v9 }
  0xf6   :  { %v676_v48 = vmax.f32 %v454_v36, 0.0  ;;  %v720_v15 = vmax.f32 %v630_v8, 0.0 }
  0xf7   :  { %v674_v51 = vmax.f32 %v446_v41, 0.0  ;;  %v718_v18 = vmax.f32 %v622_v12, 0.0 }
  0xf8   :  { %v1598_v53 = vpack.c.bf16 %v676_v48, %v675_v45  ;;  %v1616_v20 = vpack.c.bf16 %v720_v15, %v719_v7 }
  0xf9   :  { %v1602_v55 = vpack.c.bf16 %v674_v51, %v673_v50  ;;  %v1193_v56 = vpop.f32.mrb[12].mxu0  ;;  %v1620_v27 = vpack.c.bf16 %v718_v18, %v717_v11  ;;  %v1237_v28 = vpop.f32.mrb[12].mxu1 }
  0xfa   :  { %v467_v59 = vadd.f32 %v1193_v56, %v1564_v47  ;;  %v458_v62 = vpop.f32.mrb[13].mxu0  ;;  %v643_v31 = vadd.f32 %v1237_v28, %v1564_v47  ;;  %v634_v32 = vpop.f32.mrb[13].mxu1 }
  0xfb   :  { %v459_v1 = vadd.f32 %v1564_v47, %v458_v62  ;;  %v1194_v2 = vpop.f32.mrb[14].mxu0  ;;  %v635_v35 = vadd.f32 %v1564_v47, %v634_v32  ;;  %v1238_v36 = vpop.f32.mrb[14].mxu1 }
  0xfc   :  { %v470_v5 = vadd.f32 %v1194_v2, %v1564_v47  ;;  %v461_v6 = vpop.f32.mrb[15].mxu0  ;;  %v679_v13 = vmax.f32 %v467_v59, 0.0  ;;  %v723_v39 = vmax.f32 %v643_v31, 0.0  ;;  %v646_v40 = vadd.f32 %v1238_v36, %v1564_v47  ;;  %v637_v41 = vpop.f32.mrb[15].mxu1 }
  0xfd   :  { %v462_v10 = vadd.f32 %v1564_v47, %v461_v6  ;;  %v677_v16 = vmax.f32 %v459_v1, 0.0  ;;  %v721_v44 = vmax.f32 %v635_v35, 0.0  ;;  %v638_v45 = vadd.f32 %v1564_v47, %v637_v41 }
  0xfe   :  { %v680_v14 = vmax.f32 %v470_v5, 0.0  ;;  %v724_v50 = vmax.f32 %v646_v40, 0.0 }
  0xff   :  { %v678_v17 = vmax.f32 %v462_v10, 0.0  ;;  %v722_v56 = vmax.f32 %v638_v45, 0.0 }
 0x100   :  { %v1614_v19 = vpack.c.bf16 %v680_v14, %v679_v13  ;;  %v1630_v59 = vpack.c.bf16 %v724_v50, %v723_v39 }
 0x101   :  { %v1618_v21 = vpack.c.bf16 %v678_v17, %v677_v16  ;;  %v1197_v25 = vpop.f32.mrb[16].mxu0  ;;  %v1632_v0 = vpack.c.bf16 %v722_v56, %v721_v44  ;;  %v1241_v1 = vpop.f32.mrb[16].mxu1 }
 0x102   :  { %v483_v29 = vadd.f32 %v1197_v25, %v1564_v47  ;;  %v474_v30 = vpop.f32.mrb[17].mxu0  ;;  %v659_v4 = vadd.f32 %v1241_v1, %v1564_v47  ;;  %v650_v5 = vpop.f32.mrb[17].mxu1 }
 0x103   :  { %v475_v33 = vadd.f32 %v1564_v47, %v474_v30  ;;  %v1198_v34 = vpop.f32.mrb[18].mxu0  ;;  %v651_v8 = vadd.f32 %v1564_v47, %v650_v5  ;;  %v1242_v9 = vpop.f32.mrb[18].mxu1 }
 0x104   :  { %v486_v37 = vadd.f32 %v1198_v34, %v1564_v47  ;;  %v477_v38 = vpop.f32.mrb[19].mxu0  ;;  %v683_v48 = vmax.f32 %v483_v29, 0.0  ;;  %v727_v12 = vmax.f32 %v659_v4, 0.0  ;;  %v662_v13 = vadd.f32 %v1242_v9, %v1564_v47  ;;  %v653_v14 = vpop.f32.mrb[19].mxu1 }
 0x105   :  { %v478_v42 = vadd.f32 %v1564_v47, %v477_v38  ;;  %v681_v51 = vmax.f32 %v475_v33, 0.0  ;;  %v725_v16 = vmax.f32 %v651_v8, 0.0  ;;  %v654_v17 = vadd.f32 %v1564_v47, %v653_v14 }
 0x106   :  { %v684_v49 = vmax.f32 %v486_v37, 0.0  ;;  %v728_v28 = vmax.f32 %v662_v13, 0.0 }
 0x107   :  { %v682_v52 = vmax.f32 %v478_v42, 0.0  ;;  %v726_v31 = vmax.f32 %v654_v17, 0.0 }
 0x108   :  { %v1258_v58 = vpack.c.bf16 %v684_v49, %v683_v48 }
 0x109   :  { %v1254_v62 = vpack.c.bf16 %v682_v52, %v681_v51  ;;  %v1201_v63 = vpop.f32.mrb[20].mxu0  ;;  %v1646_v35 = vpack.c.bf16 %v726_v31, %v725_v16 }
 0x10a   :  { %v499_v2 = vadd.f32 %v1201_v63, %v1564_v47  ;;  %v490_v3 = vpop.f32.mrb[21].mxu0 }
 0x10b   :  { %v491_v6 = vadd.f32 %v1564_v47, %v490_v3  ;;  %v1202_v7 = vpop.f32.mrb[22].mxu0  ;;  %1255 = vmatprep.subr.bf16.mxu1 %v1254_v62 }
 0x10c   :  { %v502_v10 = vadd.f32 %v1202_v7, %v1564_v47  ;;  %v493_v11 = vpop.f32.mrb[23].mxu0  ;;  %1257 = vmatpush3.bf16.msra.mxu1 %v1572_v61  ;;  %v687_v18 = vmax.f32 %v499_v2, 0.0  ;;  %v1644_v61 = vpack.c.bf16 %v728_v28, %v727_v12 }
 0x10d   :  { %v494_v15 = vadd.f32 %v1564_v47, %v493_v11  ;;  %1259 = vmatprep.subr.bf16.mxu1 %v1258_v58  ;;  %v685_v29 = vmax.f32 %v491_v6, 0.0 }
 0x10e   :  { %v688_v25 = vmax.f32 %v502_v10, 0.0 }
 0x10f   :  { %v686_v30 = vmax.f32 %v494_v15, 0.0 }
 0x110   :  { %v1266_v32 = vpack.c.bf16 %v688_v25, %v687_v18  ;;  %1261 = vmatpush3.bf16.msra.mxu1 %v1570_v60  ;;  %v747_v18 = vcombine.high %v1559_v46, %v1559_v46 }
 0x111   :  { %v1262_v33 = vpack.c.bf16 %v686_v30, %v685_v29  ;;  %v1205_v34 = vpop.f32.mrb[24].mxu0 }
 0x112   :  { %v515_v36 = vadd.f32 %v1205_v34, %v1564_v47  ;;  %v506_v37 = vpop.f32.mrb[25].mxu0 }
 0x113   :  { %v507_v38 = vadd.f32 %v1564_v47, %v506_v37  ;;  %v1206_v39 = vpop.f32.mrb[26].mxu0  ;;  %1263 = vmatprep.subr.bf16.mxu1 %v1262_v33 }
 0x114   :  { %v518_v40 = vadd.f32 %v1206_v39, %v1564_v47  ;;  %v509_v41 = vpop.f32.mrb[27].mxu0  ;;  %1265 = vmatpush3.bf16.msra.mxu1 %v1586_v24  ;;  %v691_v42 = vmax.f32 %v515_v36, 0.0 }
 0x115   :  { %v510_v60 = vadd.f32 %v1564_v47, %v509_v41  ;;  %1267 = vmatprep.subr.bf16.mxu1 %v1266_v32  ;;  %v689_v45 = vmax.f32 %v507_v38, 0.0 }
 0x116   :  { %v692_v44 = vmax.f32 %v518_v40, 0.0 }
 0x117   :  { %v690_v48 = vmax.f32 %v510_v60, 0.0 }
 0x118   :  { %v1274_v49 = vpack.c.bf16 %v692_v44, %v691_v42  ;;  %1269 = vmatpush3.bf16.msra.mxu1 %v1582_v22 }
 0x119   :  { %v1270_v50 = vpack.c.bf16 %v690_v48, %v689_v45  ;;  %v1209_v51 = vpop.f32.mrb[28].mxu0 }
 0x11a   :  { %v531_v52 = vadd.f32 %v1209_v51, %v1564_v47  ;;  %v522_v56 = vpop.f32.mrb[29].mxu0 }
 0x11b   :  { %v523_v58 = vadd.f32 %v1564_v47, %v522_v56  ;;  %v1210_v62 = vpop.f32.mrb[30].mxu0  ;;  %1271 = vmatprep.subr.bf16.mxu1 %v1270_v50 }
 0x11c   :  { %v534_v24 = vadd.f32 %v1210_v62, %v1564_v47  ;;  %v525_v63 = vpop.f32.mrb[31].mxu0  ;;  %1273 = vmatpush3.bf16.msra.mxu1 %v1602_v55  ;;  %v695_v2 = vmax.f32 %v531_v52, 0.0 }
 0x11d   :  { %v526_v1 = vadd.f32 %v1564_v47, %v525_v63  ;;  %1275 = vmatprep.subr.bf16.mxu1 %v1274_v49  ;;  %v693_v22 = vmax.f32 %v523_v58, 0.0 }
 0x11e   :  { %v696_v3 = vmax.f32 %v534_v24, 0.0 }
 0x11f   :  { %v694_v4 = vmax.f32 %v526_v1, 0.0 }
 0x120   :  { %v1282_v5 = vpack.c.bf16 %v696_v3, %v695_v2  ;;  %1277 = vmatpush3.bf16.msra.mxu1 %v1598_v53  ;;  %v1059_v2 = vld [vmem:[%s1714_s5] ss:$0 sm:$0xff] }
 0x121   :  { %v1278_v6 = vpack.c.bf16 %v694_v4, %v693_v22  ;;  %v1213_v7 = vpop.f32.mrb[32].mxu0 }
 0x122   :  { %v547_v8 = vadd.f32 %v1213_v7, %v1564_v47  ;;  %v538_v9 = vpop.f32.mrb[33].mxu0 }
 0x123   :  { %v539_v10 = vadd.f32 %v1564_v47, %v538_v9  ;;  %1279 = vmatprep.subr.bf16.mxu1 %v1278_v6  ;;  %v1214_v11 = vpop.f32.mrb[34].mxu0 }
 0x124   :  { %v699_v55 = vmax.f32 %v547_v8, 0.0  ;;  %v550_v12 = vadd.f32 %v1214_v11, %v1564_v47  ;;  %1281 = vmatpush3.bf16.msra.mxu1 %v1618_v21  ;;  %v541_v13 = vpop.f32.mrb[35].mxu0 }
 0x125   :  { %v542_v14 = vadd.f32 %v1564_v47, %v541_v13  ;;  %1283 = vmatprep.subr.bf16.mxu1 %v1282_v5  ;;  %v697_v53 = vmax.f32 %v539_v10, 0.0 }
 0x126   :  { %v700_v15 = vmax.f32 %v550_v12, 0.0 }
 0x127   :  { %v698_v16 = vmax.f32 %v542_v14, 0.0 }
 0x128   :  { %v1292_v17 = vpack.c.bf16 %v700_v15, %v699_v55  ;;  %1285 = vmatpush3.bf16.msra.mxu1 %v1614_v19 }
 0x129   :  { %v1288_v25 = vpack.c.bf16 %v698_v16, %v697_v53  ;;  %v1217_v28 = vpop.f32.mrb[36].mxu0  ;;  %1287 = vmatprep.subr.bf16.mxu1 %v1604_v57 }
 0x12a   :  { %v563_v29 = vadd.f32 %v1217_v28, %v1564_v47  ;;  %v554_v21 = vpop.f32.mrb[37].mxu0 }
 0x12b   :  { %v555_v30 = vadd.f32 %v1564_v47, %v554_v21  ;;  %v1218_v31 = vpop.f32.mrb[38].mxu0  ;;  %817 = vmatmul.mubr.f32.vlgmr.msra.gmra.mrb[20].mxu1 %v1555_v43 }
 0x12c   :  { %v703_v32 = vmax.f32 %v563_v29, 0.0  ;;  %v566_v33 = vadd.f32 %v1218_v31, %v1564_v47  ;;  %1289 = vmatpush3.bf16.msra.mxu1 %v1288_v25  ;;  %v557_v19 = vpop.f32.mrb[39].mxu0  ;;  %886 = vmatprep.mubr.f32.mxu1 %v747_v18 }
 0x12d   :  { %v558_v34 = vadd.f32 %v1564_v47, %v557_v19  ;;  %1291 = vmatprep.subr.bf16.mxu1 %v1600_v54  ;;  %v701_v57 = vmax.f32 %v555_v30, 0.0 }
 0x12e   :  { %v704_v36 = vmax.f32 %v566_v33, 0.0 }
 0x12f   :  { %v702_v37 = vmax.f32 %v558_v34, 0.0 }
 0x130   :  { %v1300_v38 = vpack.c.bf16 %v704_v36, %v703_v32  ;;  %1293 = vmatpush3.bf16.msra.mxu1 %v1292_v17 }
 0x131   :  { %v1296_v39 = vpack.c.bf16 %v702_v37, %v701_v57  ;;  %v1221_v40 = vpop.f32.mrb[40].mxu0  ;;  %1295 = vmatprep.subr.bf16.mxu1 %v1620_v27 }
 0x132   :  { %v579_v43 = vadd.f32 %v1221_v40, %v1564_v47  ;;  %v570_v41 = vpop.f32.mrb[41].mxu0 }
 0x133   :  { %v571_v60 = vadd.f32 %v1564_v47, %v570_v41  ;;  %v1222_v42 = vpop.f32.mrb[42].mxu0 }
 0x134   :  { %v707_v44 = vmax.f32 %v579_v43, 0.0  ;;  %v582_v45 = vadd.f32 %v1222_v42, %v1564_v47  ;;  %1297 = vmatpush3.bf16.msra.mxu1 %v1296_v39  ;;  %v573_v54 = vpop.f32.mrb[43].mxu0 }
 0x135   :  { %v574_v48 = vadd.f32 %v1564_v47, %v573_v54  ;;  %1299 = vmatprep.subr.bf16.mxu1 %v1616_v20  ;;  %v705_v50 = vmax.f32 %v571_v60, 0.0  ;;  %v1377_v47 = vmov 0.0|0.0   ;;  %v892_v20 = vld [vmem:[%s1713_s4] sm:$0xff] }
 0x136   :  { %v708_v49 = vmax.f32 %v582_v45, 0.0 }
 0x137   :  { %v706_v51 = vmax.f32 %v574_v48, 0.0 }
 0x138   :  { %v1308_v52 = vpack.c.bf16 %v708_v49, %v707_v44  ;;  %1301 = vmatpush3.bf16.msra.mxu1 %v1300_v38 }
 0x139   :  { %v1304_v27 = vpack.c.bf16 %v706_v51, %v705_v50  ;;  %1303 = vmatprep.subr.bf16.mxu1 %v1632_v0 }
 0x13c   :  { %1305 = vmatpush3.bf16.msra.mxu1 %v1304_v27 }
 0x13d   :  { %1307 = vmatprep.subr.bf16.mxu1 %v1630_v59  ;;  %v893_v59 = vld [vmem:[%s1713_s4 + $0x8] sm:$0xff] }
 0x13e   :  { %v1319_v0 = vpack.c.bf16 %v893_v59, %v892_v20 }
 0x140   :  { %1309 = vmatpush3.bf16.msra.mxu1 %v1308_v52 }
 0x141   :  { %1311 = vmatprep.subr.bf16.mxu1 %v1646_v35 }
 0x144   :  { %1313 = vmatpush3.bf16.msra.mxu1 %v1588_v26  ;;  %v894_v26 = vld [vmem:[%s1713_s4 + $0x10] sm:$0xff] }
 0x145   :  { %1315 = vmatprep.subr.bf16.mxu1 %v1644_v61  ;;  %v1379_v61 = vmov 0.0  }
 0x148   :  { %1317 = vmatpush3.bf16.msra.mxu1 %v1584_v23 }
 0x149   :  { %1318 = vmatprep.subr.bf16.mxu1 %v1377_v47 }
 0x14b   :  { %887 = vmatmul.mubr.f32.vlgmr.msra.gmra.mrb[22].mxu1 %v1559_v46  ;;  %v895_v46 = vld [vmem:[%s1713_s4 + $0x18] sm:$0xff] }
 0x14c   :  { %1320 = vmatpush3.bf16.msra.mxu1 %v1319_v0  ;;  %v1322_v23 = vpack.c.bf16 %v895_v46, %v894_v26  ;;  %1251 = vmatprep.mubr.msk.f32.mxu1 %vm1378_vm2, %v1379_v61 }
 0x14d   :  { %1321 = vmatprep.subr.bf16.mxu1 %v1377_v47 }
 0x150   :  { %1323 = vmatpush3.bf16.msra.mxu1 %v1322_v23 }
 0x1fe   :  { %v1130_v35 = vpop.f32.mrb[20].mxu1 }
 0x1ff   :  { %v1131_v56 = vpop.f32.mrb[21].mxu1 }
 0x200   :  { %v1132_v58 = vadd.f32 %v1131_v56, %v1130_v35 }
 0x21e   :  { %v1165_v62 = vpop.f32.mrb[22].mxu1 }
 0x21f   :  { %v1166_v24 = vpop.f32.mrb[23].mxu1 }
 0x220   :  { %v1167_v63 = vadd.f32 %v1166_v24, %v1165_v62 }
 0x222   :  { %v889_v1 = vadd.f32 %v1167_v63, %v1132_v58 }
 0x224   :  { %1252 = vmatmul.mubr.msk.f32.vlgmr.msra.gmra.mrb[24].mxu1 %vm903_vm3, %v889_v1 }
 0x2f7   :  { %v973_v3 = vpop.f32.mrb[24].mxu1 }
 0x2f8   :  { %v974_v22 = vadd.f32 %v1059_v2, %v973_v3  ;;  %v1253_v4 = vpop.f32.mrb[25].mxu1 }
 0x2fa   :  { %978 = vst.msk [vmem:[%s1715_s6] sm:$0x3] %vm977_vm4, %v974_v22  ;;  %v1061_v5 = vmul.f32 -1.442695, %v974_v22 }
 0x2fc   :  { %1372 = vpow2.f32 %v1061_v5 }
 0x306   :  { %v1373_v6 = vpop.eup %1372 }
 0x307   :  { %v982_v7 = vadd.f32 1.0, %v1373_v6 }
 0x309   :  { %1374 = vrcp.f32 %v982_v7 }
 0x313   :  { %v1375_v8 = vpop.eup %1374 }
 0x314   :  { %1062 = vst.msk [vmem:[%s1715_s6 + $0x2] sm:$0x3] %vm977_vm4, %v1375_v8 }

</bundles_post_ra>
